<compile_context>
chip_gen: v6e
topology: v6e:2x2x1
jax: 0.10.0
libtpu: 0.0.40
codegen_flags: <defaults>
</compile_context>

<pallas_src>
import functools

import jax
import jax.numpy as jnp
from jax import lax
from jax.experimental import pallas as pl
from jax.experimental.pallas import tpu as pltpu


# ----------------------------------------------------------------------------
# Kernels
# ----------------------------------------------------------------------------
def _value_head_kernel_resident(x_ref, w1_ref, b1_ref, w2_ref, b2_ref, o_ref):
    # x_ref : (TB, E)   VMEM (f32 or bf16)
    # w1_ref: (E, H)    VMEM (grid-constant -> resident)
    # b1_ref: (1, H)    VMEM f32
    # w2_ref: (1, H)    VMEM f32
    # b2_ref: (1,)      SMEM f32 scalar
    # o_ref : (1, TB)   VMEM f32 (lane-dense, transposed output)
    acc = jnp.dot(x_ref[...], w1_ref[...], preferred_element_type=jnp.float32)
    h = jnp.maximum(acc + b1_ref[...], 0.0)                       # (TB, H) f32
    # Second layer: (1,H) . (TB,H)^T -> (1,TB), lane-dense, no relayout.
    v = lax.dot_general(w2_ref[...], h, (((1,), (1,)), ((), ())),
                        preferred_element_type=jnp.float32)
    o_ref[...] = (v + b2_ref[0]).astype(o_ref.dtype)


def _value_head_kernel_tiled(x_ref, w1_ref, b1_ref, w2_ref, b2_ref, o_ref,
                             acc_ref):
    # Same as above but K-tiled with an f32 VMEM accumulator (TB, H).
    k = pl.program_id(1)

    @pl.when(k == 0)
    def _init():
        acc_ref[...] = jnp.zeros_like(acc_ref)

    acc_ref[...] += jnp.dot(
        x_ref[...], w1_ref[...], preferred_element_type=jnp.float32)

    @pl.when(k == pl.num_programs(1) - 1)
    def _epilogue():
        h = jnp.maximum(acc_ref[...] + b1_ref[...], 0.0)          # (TB, H) f32
        v = lax.dot_general(w2_ref[...], h, (((1,), (1,)), ((), ())),
                            preferred_element_type=jnp.float32)   # (1, TB)
        o_ref[...] = (v + b2_ref[0]).astype(o_ref.dtype)


# ----------------------------------------------------------------------------
# Tiling helpers
# ----------------------------------------------------------------------------
def _round_up(n: int, m: int) -> int:
    return ((n + m - 1) // m) * m


def _largest_divisor_tile(total: int, max_tile: int, align: int) -> int:
    """Largest t <= max_tile with t % align == 0 and total % t == 0; else total."""
    if total <= max_tile:
        return total
    t = (max_tile // align) * align
    while t >= align:
        if total % t == 0:
            return t
        t -= align
    return total


def _vmem_budget_and_limit():
    """(tile budget, Mosaic vmem_limit) derived from the physical VMEM size."""
    try:
        cap = int(pltpu.get_tpu_info().vmem_capacity_bytes)
    except Exception:
        cap = 64 * 1024 * 1024  # conservative (v7x-sized) fallback
    # ~2/3 for our tiles, ~7/8 as the scoped-VMEM limit: leaves headroom for
    # Mosaic-internal scratch / semaphores on every generation.
    return (cap * 2) // 3, (cap * 7) // 8


# ----------------------------------------------------------------------------
# Forward wrapper
# ----------------------------------------------------------------------------
@functools.partial(jax.jit, static_argnames=("compute_dtype",
                                             "vmem_budget_bytes"))
def value_head_forward(x, w1, b1, w2_row, b2, *, compute_dtype=None,
                       vmem_budget_bytes=None):
    """x: (B, E); w1: (E, H); b1: (1, H); w2_row: (1, H); b2: (1,).

    Returns (B, 1) float32.  compute_dtype=jnp.bfloat16 halves x/W1 HBM
    traffic (f32 accumulation and f32 epilogue are kept).
    vmem_budget_bytes overrides the auto VMEM tile budget (mainly for tests).
    """
    B, E = x.shape
    H = w1.shape[1]

    # --- Pad E and H to lane multiples (zero padding is exact for this net:
    #     padded hidden units see zero weight, zero bias and zero w2).
    E_p = _round_up(E, 128)
    H_p = _round_up(H, 128)
    if E_p != E:
        x = jnp.pad(x, ((0, 0), (0, E_p - E)))
        w1 = jnp.pad(w1, ((0, E_p - E), (0, 0)))
    if H_p != H:
        w1 = jnp.pad(w1, ((0, 0), (0, H_p - H)))
        b1 = jnp.pad(b1, ((0, 0), (0, H_p - H)))
        w2_row = jnp.pad(w2_row, ((0, 0), (0, H_p - H)))

    if compute_dtype is not None:
        x = x.astype(compute_dtype)
        w1 = w1.astype(compute_dtype)
    b1 = b1.astype(jnp.float32)
    w2_row = w2_row.astype(jnp.float32)
    b2 = b2.astype(jnp.float32)
    in_bytes = jnp.dtype(x.dtype).itemsize

    auto_budget, vmem_limit = _vmem_budget_and_limit()
    budget = auto_budget if vmem_budget_bytes is None else int(vmem_budget_bytes)

    # --- Batch tile: lane dim of the transposed output -> 128-multiples.
    #     Cap so B//TB >= 2 when B is large enough (v7x megacore sharding of
    #     the "parallel" batch axis); cap 2048 otherwise.
    if B >= 256:
        tb_cap = max(128, min(2048, ((B // 2) // 128) * 128))
    else:
        tb_cap = 2048
    TB = _largest_divisor_tile(B, tb_cap, 128)

    # --- Resident-W1 feasibility (conservatively count double buffers).
    resident_bytes = (2 * E_p * H_p * in_bytes        # W1
                      + 2 * TB * E_p * in_bytes       # x tile (double-buffered)
                      + TB * H_p * 4                  # hidden intermediate
                      + 4 * H_p * 4 + 2 * TB * 4)     # b1, w2, output

    smem_spec = pl.BlockSpec(memory_space=pltpu.MemorySpace.SMEM)

    if resident_bytes <= budget:
        # ---------- Path A: W1 resident, single pass over E, grid = batch only.
        grid = (B // TB,)
        out_t = pl.pallas_call(
            _value_head_kernel_resident,
            out_shape=jax.ShapeDtypeStruct((1, B), jnp.float32),
            grid_spec=pltpu.PrefetchScalarGridSpec(
                num_scalar_prefetch=0,
                grid=grid,
                in_specs=[
                    # x tiles stream over the batch and double-buffer.
                    pl.BlockSpec((TB, E_p), lambda i: (i, 0)),
                    # Grid-constant blocks: DMA'd once, VMEM-resident after.
                    # TODO(synk): pipeline_mode=pl.Buffered(1) here would also
                    # reclaim the redundant second buffer of these constants.
                    pl.BlockSpec((E_p, H_p), lambda i: (0, 0)),
                    pl.BlockSpec((1, H_p), lambda i: (0, 0)),
                    pl.BlockSpec((1, H_p), lambda i: (0, 0)),
                    smem_spec,
                ],
                # Lane-dense transposed output, one write per batch tile.
                out_specs=pl.BlockSpec((1, TB), lambda i: (0, i)),
            ),
            compiler_params=pltpu.CompilerParams(
                dimension_semantics=("parallel",),
                vmem_limit_bytes=vmem_limit,
            ),
        )(x, w1, b1, w2_row, b2)
    else:
        # ---------- Path B: K-tiled fallback with f32 accumulator scratch.
        fixed = TB * H_p * 4 + 4 * H_p * 4 + 2 * TB * 4
        per_tk = max(1, 2 * (TB + H_p) * in_bytes)
        tk_cap = max(128, (budget - fixed) // per_tk)
        TK = _largest_divisor_tile(E_p, int(tk_cap), 128)  # E_p % 128 == 0
        grid = (B // TB, E_p // TK)
        out_t = pl.pallas_call(
            _value_head_kernel_tiled,
            out_shape=jax.ShapeDtypeStruct((1, B), jnp.float32),
            grid_spec=pltpu.PrefetchScalarGridSpec(
                num_scalar_prefetch=0,
                grid=grid,
                in_specs=[
                    pl.BlockSpec((TB, TK), lambda i, k: (i, k)),
                    pl.BlockSpec((TK, H_p), lambda i, k: (k, 0)),
                    pl.BlockSpec((1, H_p), lambda i, k: (0, 0)),
                    pl.BlockSpec((1, H_p), lambda i, k: (0, 0)),
                    smem_spec,
                ],
                out_specs=pl.BlockSpec((1, TB), lambda i, k: (0, i)),
                scratch_shapes=[pltpu.VMEM((TB, H_p), jnp.float32)],
            ),
            compiler_params=pltpu.CompilerParams(
                dimension_semantics=("parallel", "arbitrary"),
                vmem_limit_bytes=vmem_limit,
            ),
        )(x, w1, b1, w2_row, b2)

    # (1, B) -> (B, 1) to match nn.Linear(hidden, 1) output shape.
    return out_t.T


# ----------------------------------------------------------------------------
# Params / reference
# ----------------------------------------------------------------------------
def init_params(key, embedding_size, hidden_size):
    """Deterministic init mirroring nn.Linear's uniform(-1/sqrt(fan_in), ...)."""
    k1, k2, k3, k4 = jax.random.split(key, 4)
    bound1 = 1.0 / jnp.sqrt(embedding_size)
    bound2 = 1.0 / jnp.sqrt(hidden_size)
    w1 = jax.random.uniform(
        k1, (embedding_size, hidden_size), jnp.float32, -bound1, bound1)
    b1 = jax.random.uniform(k2, (1, hidden_size), jnp.float32, -bound1, bound1)
    w2_row = jax.random.uniform(k3, (1, hidden_size), jnp.float32, -bound2, bound2)
    b2 = jax.random.uniform(k4, (1,), jnp.float32, -bound2, bound2)
    return w1, b1, w2_row, b2


def reference_forward(x, w1, b1, w2_row, b2):
    h = jnp.maximum(jnp.dot(x, w1, precision=lax.Precision.HIGHEST) + b1, 0.0)
    return jnp.dot(h, w2_row.T, precision=lax.Precision.HIGHEST) + b2  # (B, 1)


# ----------------------------------------------------------------------------
# Self-test
# ----------------------------------------------------------------------------
if __name__ == "__main__":
    # --- Test 1: small spec-consistent shapes (resident path, single grid step).
    batch, embedding_size, hidden_size = 2, 32, 32
    key = jax.random.PRNGKey(0)
    kx, kp = jax.random.split(key)
    x = jax.random.normal(kx, (batch, embedding_size), dtype=jnp.float32)
    w1, b1, w2_row, b2 = init_params(kp, embedding_size, hidden_size)

    out = jax.block_until_ready(value_head_forward(x, w1, b1, w2_row, b2))
    ref = reference_forward(x, w1, b1, w2_row, b2)
    assert out.shape == (batch, 1), f"bad shape {out.shape}"
    assert jnp.allclose(out, ref, atol=1e-5, rtol=1e-5), "mismatch (small f32)"

    # --- Test 2: larger unaligned shapes, forced K-tiled path (multi batch
    #     tile + K accumulation + padding exercised via a tiny VMEM budget).
    B2, E2, H2 = 384, 320, 96
    kx2, kp2 = jax.random.split(jax.random.PRNGKey(1))
    x2 = jax.random.normal(kx2, (B2, E2), dtype=jnp.float32)
    w1_2, b1_2, w2_2, b2_2 = init_params(kp2, E2, H2)
    out2 = jax.block_until_ready(
        value_head_forward(x2, w1_2, b1_2, w2_2, b2_2,
                           vmem_budget_bytes=512 * 1024))
    ref2 = reference_forward(x2, w1_2, b1_2, w2_2, b2_2)
    assert out2.shape == (B2, 1), f"bad shape {out2.shape}"
    assert jnp.allclose(out2, ref2, atol=1e-4, rtol=1e-4), "mismatch (tiled f32)"

    # --- Test 3: bf16 compute path (f32 accumulation), compared against an
    #     f32 reference on bf16-rounded inputs.
    out3 = jax.block_until_ready(
        value_head_forward(x2, w1_2, b1_2, w2_2, b2_2,
                           compute_dtype=jnp.bfloat16))
    ref3 = reference_forward(
        x2.astype(jnp.bfloat16).astype(jnp.float32),
        w1_2.astype(jnp.bfloat16).astype(jnp.float32), b1_2, w2_2, b2_2)
    assert jnp.allclose(out3, ref3, atol=2e-2, rtol=2e-2), "mismatch (bf16)"

    print("KERNEL_OK")
</pallas_src>

<mosaic_0001>
module attributes {stable_mosaic.version = 11 : i64} {
  func.func @_value_head_kernel_resident(%arg0: i32, %arg1: memref<2x128xf32, #tpu.memory_space<vmem>>, %arg2: memref<128x128xf32, #tpu.memory_space<vmem>>, %arg3: memref<1x128xf32, #tpu.memory_space<vmem>>, %arg4: memref<1x128xf32, #tpu.memory_space<vmem>>, %arg5: memref<1xf32, #tpu.memory_space<smem>>, %arg6: memref<1x2xf32, #tpu.memory_space<vmem>>) attributes {dimension_semantics = [#tpu.dimension_semantics<parallel>], iteration_bounds = array<i64: 1>, scalar_prefetch = 0 : i64, scratch_operands = 0 : i64, tpu.core_type = #tpu.core_type<tc>, window_params = [{transform_indices = @transform_0, window_bounds = array<i64: 2, 128>}, {pipeline_mode = #tpu.pipeline_mode<synchronous>, transform_indices = @transform_1, window_bounds = array<i64: 128, 128>}, {pipeline_mode = #tpu.pipeline_mode<synchronous>, transform_indices = @transform_2, window_bounds = array<i64: 1, 128>}, {pipeline_mode = #tpu.pipeline_mode<synchronous>, transform_indices = @transform_3, window_bounds = array<i64: 1, 128>}, {transform_indices = @transform_4, window_bounds = array<i64: 1>}, {transform_indices = @transform_5, window_bounds = array<i64: 1, 2>}]} {
    %c0 = arith.constant 0 : index
    %c0_0 = arith.constant 0 : index
    %0 = vector.load %arg1[%c0, %c0_0] : memref<2x128xf32, #tpu.memory_space<vmem>>, vector<2x128xf32>
    %c0_1 = arith.constant 0 : index
    %c0_2 = arith.constant 0 : index
    %1 = vector.load %arg2[%c0_1, %c0_2] : memref<128x128xf32, #tpu.memory_space<vmem>>, vector<128x128xf32>
    %cst = arith.constant dense<0.000000e+00> : vector<2x128xf32>
    %2 = tpu.matmul %0, %1, %cst {dimension_numbers = #tpu.dot_dimension_numbers<[1], [0], [0], [1], [0, 0, 1, 1], [], []>} : vector<2x128xf32>, vector<128x128xf32>, vector<2x128xf32> -> vector<2x128xf32>
    %c0_3 = arith.constant 0 : index
    %c0_4 = arith.constant 0 : index
    %3 = vector.load %arg3[%c0_3, %c0_4] : memref<1x128xf32, #tpu.memory_space<vmem>>, vector<1x128xf32>
    %4 = vector.broadcast %3 : vector<1x128xf32> to vector<2x128xf32>
    %5 = arith.addf %2, %4 : vector<2x128xf32>
    %cst_5 = arith.constant 0.000000e+00 : f32
    %6 = vector.broadcast %cst_5 : f32 to vector<2x128xf32>
    %7 = arith.maximumf %5, %6 : vector<2x128xf32>
    %c0_6 = arith.constant 0 : index
    %c0_7 = arith.constant 0 : index
    %8 = vector.load %arg4[%c0_6, %c0_7] : memref<1x128xf32, #tpu.memory_space<vmem>>, vector<1x128xf32>
    %cst_8 = arith.constant dense<0.000000e+00> : vector<1x2xf32>
    %9 = tpu.matmul %8, %7, %cst_8 {dimension_numbers = #tpu.dot_dimension_numbers<[1], [1], [0], [0], [0, 0, 1, 0], [], []>} : vector<1x128xf32>, vector<2x128xf32>, vector<1x2xf32> -> vector<1x2xf32>
    %c0_9 = arith.constant 0 : index
    %10 = memref.load %arg5[%c0_9] : memref<1xf32, #tpu.memory_space<smem>>
    %11 = vector.broadcast %10 : f32 to vector<1x2xf32>
    %12 = arith.addf %9, %11 : vector<1x2xf32>
    %c0_10 = arith.constant 0 : index
    %c0_11 = arith.constant 0 : index
    %13 = vector.load %arg6[%c0_10, %c0_11] : memref<1x2xf32, #tpu.memory_space<vmem>>, vector<1x2xf32>
    tpu.vector_store %arg6[%c0_10, %c0_11], %12 {strides = array<i32>} : memref<1x2xf32, #tpu.memory_space<vmem>>, vector<1x2xf32>,
    return
  }
  func.func @transform_0(%arg0: i32) -> (i32, i32) {
    %c0_i32 = arith.constant 0 : i32
    %c0_i32_0 = arith.constant 0 : i32
    return %arg0, %c0_i32 : i32, i32
  }
  func.func @transform_1(%arg0: i32) -> (i32, i32) {
    %c0_i32 = arith.constant 0 : i32
    %c0_i32_0 = arith.constant 0 : i32
    %c0_i32_1 = arith.constant 0 : i32
    return %c0_i32, %c0_i32_0 : i32, i32
  }
  func.func @transform_2(%arg0: i32) -> (i32, i32) {
    %c0_i32 = arith.constant 0 : i32
    %c0_i32_0 = arith.constant 0 : i32
    %c0_i32_1 = arith.constant 0 : i32
    return %c0_i32, %c0_i32_0 : i32, i32
  }
  func.func @transform_3(%arg0: i32) -> (i32, i32) {
    %c0_i32 = arith.constant 0 : i32
    %c0_i32_0 = arith.constant 0 : i32
    %c0_i32_1 = arith.constant 0 : i32
    return %c0_i32, %c0_i32_0 : i32, i32
  }
  func.func @transform_4(%arg0: i32) -> i32 {
    %c0_i32 = arith.constant 0 : i32
    %c0_i32_0 = arith.constant 0 : i32
    return %c0_i32 : i32
  }
  func.func @transform_5(%arg0: i32) -> (i32, i32) {
    %c0_i32 = arith.constant 0 : i32
    %c0_i32_0 = arith.constant 0 : i32
    return %c0_i32, %arg0 : i32, i32
  }
}

</mosaic_0001>

<bundles_post_ra>
// kernel: value_head_forward.1
= control target key start
LH: loop header
LB: loop body
LE: loop exit
PB: predicated region body
PF: predicated region fallthrough
CT: control target
= control target key end

     0   :  { %v291_v1 = vmov 0.0   ;;  %vm292_vm0 = vmmov 0   ;;  %s387_s0 = inlined_call_operand.vmem [shape: f32[2,128], index: 0, kind: input, shape index: {}]   ;;  %s388_s1 = inlined_call_operand.vmem [shape: f32[128,128], index: 1, kind: input, shape index: {}]   ;;  %s389_s2 = inlined_call_operand.vmem [shape: f32[1,128], index: 2, kind: input, shape index: {}]   ;;  %s390_s3 = inlined_call_operand.vmem [shape: f32[1,128], index: 3, kind: input, shape index: {}]   ;;  %s391_s4 = inlined_call_operand.<no memory space> [shape: f32[1], index: 4, kind: input, shape index: {}]   ;;  %s392_s5 = inlined_call_operand.hbm [shape: f32[1,2], index: 5, kind: output, shape index: {}]  }
   0x1   :  { %v38_v0 = vld [vmem:[%s388_s1 + $0x78] sm:$0xff]  ;;  %226 = vmatprep.subr.mxu0 %v291_v1  ;;  %v37_v2 = vld [vmem:[%s388_s1 + $0x70] sm:$0xff]  ;;  %258 = vmatprep.mubr.msk.f32.mxu0 %vm292_vm0, %v291_v1  ;;  %v36_v3 = vld [vmem:[%s388_s1 + $0x68] sm:$0xff] }
   0x2   :  { %227 = vmatpush3.msra.mxu0 %v38_v0  ;;  %261 = vmatprep.subr.mxu1 %v291_v1  ;;  %v35_v4 = vld [vmem:[%s388_s1 + $0x60] sm:$0xff] }
   0x3   :  { %228 = vmatprep.subr.mxu0 %v291_v1  ;;  %263 = vmatprep.mubr.msk.f32.mxu1 %vm292_vm0, %v291_v1 }
   0x4   :  { %229 = vmatpush3.msra.mxu0 %v37_v2 }
   0x5   :  { %230 = vmatprep.subr.mxu0 %v291_v1 }
   0x6   :  { %231 = vmatpush3.msra.mxu0 %v36_v3 }
   0x7   :  { %11 = vsyncpa [#allocation4], 0  ;;  %232 = vmatprep.subr.mxu0 %v291_v1  ;;  %v34_v5 = vld [vmem:[%s388_s1 + $0x58] sm:$0xff]  ;;  %v33_v6 = vld [vmem:[%s388_s1 + $0x50] sm:$0xff]  ;;  %v119_v24 = vstv %s391_s4  ;;  %vm190_vm1 = vcmask 8192  }
   0x8   :  { %233 = vmatpush3.msra.mxu0 %v35_v4  ;;  %v32_v7 = vld [vmem:[%s388_s1 + $0x48] sm:$0xff]  ;;  %v31_v8 = vld [vmem:[%s388_s1 + $0x40] sm:$0xff]  ;;  %v30_v9 = vld [vmem:[%s388_s1 + $0x38] sm:$0xff] }
   0x9   :  { %234 = vmatprep.subr.mxu0 %v291_v1  ;;  %v29_v10 = vld [vmem:[%s388_s1 + $0x30] sm:$0xff]  ;;  %v28_v11 = vld [vmem:[%s388_s1 + $0x28] sm:$0xff]  ;;  %v27_v12 = vld [vmem:[%s388_s1 + $0x20] sm:$0xff] }
   0xa   :  { %235 = vmatpush3.msra.mxu0 %v34_v5  ;;  %v26_v13 = vld [vmem:[%s388_s1 + $0x18] sm:$0xff]  ;;  %v25_v14 = vld [vmem:[%s388_s1 + $0x10] sm:$0xff]  ;;  %v24_v15 = vld [vmem:[%s388_s1 + $0x8] sm:$0xff] }
   0xb   :  { %236 = vmatprep.subr.mxu0 %v291_v1  ;;  %v23_v16 = vld [vmem:[%s388_s1] sm:$0xff] }
   0xc   :  { %237 = vmatpush3.msra.mxu0 %v33_v6  ;;  %v22_v17 = vld [vmem:[%s387_s0] sm:$0x3]  ;;  %s293_s0 = smov [#allocation3]  }
   0xd   :  { %238 = vmatprep.subr.mxu0 %v291_v1  ;;  %v206_v18 = vld [vmem:[%s389_s2] ss:$0 sm:$0xff]  ;;  %s198_s7 = sshll.u32 %s293_s0, 4  ;;  %s199_s7 = int_to_ptr.vmem [resolvable:$true] %s198_s7 }
   0xe   :  { %239 = vmatpush3.msra.mxu0 %v32_v7  ;;  %v117_v23 = vld [vmem:[%s390_s3] sm:$0x1]  ;;  %s269_s2 = scalar_lea.vmem %s199_s7, 16  ;;  %s273_s8 = scalar_lea.vmem %s199_s7, 32 }
   0xf   :  { %240 = vmatprep.subr.mxu0 %v291_v1  ;;  %p270_p0 = scmp.ne.s32.totalorder %s199_s7, %s269_s2  ;;  %p274_p1 = scmp.lt.s32.totalorder %s199_s7, %s199_s7 }
  0x10   :  { %241 = vmatpush3.msra.mxu0 %v31_v8  ;;  %p275_p2 = scmp.lt.s32.totalorder %s273_s8, %s269_s2 }
  0x11   :  { %242 = vmatprep.subr.mxu0 %v291_v1 }
  0x12   :  { %243 = vmatpush3.msra.mxu0 %v30_v9  ;;  %p276_p3 = por %p275_p2, %p274_p1 }
  0x13   :  { %244 = vmatprep.subr.mxu0 %v291_v1 }
  0x14   :  { %245 = vmatpush3.msra.mxu0 %v29_v10  ;;  %p277_p4 = pnand %p276_p3, %p270_p0 }
  0x15   :  { %246 = vmatprep.subr.mxu0 %v291_v1 }
  0x16   :  { %247 = vmatpush3.msra.mxu0 %v28_v11 }
  0x17   :  { %248 = vmatprep.subr.mxu0 %v291_v1 }
  0x18   :  { %249 = vmatpush3.msra.mxu0 %v27_v12 }
  0x19   :  { %250 = vmatprep.subr.mxu0 %v291_v1 }
  0x1a   :  { %251 = vmatpush3.msra.mxu0 %v26_v13 }
  0x1b   :  { %252 = vmatprep.subr.mxu0 %v291_v1 }
  0x1c   :  { %253 = vmatpush3.msra.mxu0 %v25_v14 }
  0x1d   :  { %254 = vmatprep.subr.mxu0 %v291_v1 }
  0x1e   :  { %255 = vmatpush3.msra.mxu0 %v24_v15 }
  0x1f   :  { %256 = vmatprep.subr.mxu0 %v291_v1 }
  0x20   :  { %257 = vmatpush3.msra.mxu0 %v23_v16 }
  0x21   :  { %259 = vmatmul.mubr.f32.vlgmr.msra.gmra.mxu0 %v22_v17 }
  0xe1   :  { %v112_v19 = vpop.f32.mrf.mxu0 }
  0xe2   :  { %v113_v20 = vadd.f32 %v206_v18, %v112_v19 }
  0xe3   :  { %v260_v21 = vpop.f32.mrf.mxu0 }
  0xe4   :  { %v116_v22 = vmax.f32 %v113_v20, 0.0 }
  0xe6   :  { %262 = vmatpush3.xpose.msra.mxu1 %v116_v22 }
  0xe9   :  { %264 = vmatmul.mubr.f32.vlgmr.msra.gmra.mxu1 %v117_v23 }
 0x1a9   :  { %v186_v25 = vpop.f32.mrf.mxu1 }
 0x1aa   :  { %v187_v26 = vadd.f32 %v186_v25, %v119_v24 }
 0x1ab   :  { %v265_v27 = vpop.f32.mrf.mxu1 }
 0x1ac   :  { %191 = vst.msk [vmem:[#allocation3] sm:$0x1] %vm190_vm1, %v187_v26 }
 0x1ad   :  { %280 = shalt.err (!%p277_p4)
}
 0x1ae   :  { %201 = dma.vmem_to_hbm [thread:$0]  %s199_s7, 16, %s392_s5, [#allocation4]  }
 0x1af   :  { %289 = dma.done.wait [#allocation4], 16  }
 0x1b0   :  { %290 = vsyncadd [#allocation4], 4294967280 }
 0x1b1   :  { %205 = vsyncpa [#allocation4], 1 }

</bundles_post_ra>
